<compile_context>
chip_gen: v6e
topology: v6e:2x2x1
jax: 0.10.0
libtpu: 0.0.40
codegen_flags: <defaults>
</compile_context>

<pallas_src>
import functools

import jax
import jax.numpy as jnp
from jax.experimental import pallas as pl
from jax.experimental.pallas import tpu as pltpu


def _graph_norm_kernel(x_ref, gamma_ref, beta_ref, s_mean_ref, s_var_ref,
                       s_t_ref, o_ref, *, eps):
    # x_ref:      (N, Ft)   full node axis, one feature tile
    # gamma_ref:  (1, Ft)
    # beta_ref:   (1, Ft)
    # s_mean_ref: (Gp, N)   row g = 1/n_g on segment g's columns, 0 elsewhere
    # s_var_ref:  (Gp, N)   row g = 1/max(n_g-1, 1) on segment g's columns
    # s_t_ref:    (N, Gp)   0/1 node->graph indicator (transposed selector)
    # o_ref:      (N, Ft)
    xf = x_ref[...].astype(jnp.float32)                      # (N, Ft)
    gamma = gamma_ref[...].astype(jnp.float32)               # (1, Ft)
    beta = beta_ref[...].astype(jnp.float32)                 # (1, Ft)
    s_mean = s_mean_ref[...]                                 # (Gp, N)
    s_var = s_var_ref[...]                                   # (Gp, N)
    s_t = s_t_ref[...]                                       # (N, Gp)

    hi = jax.lax.Precision.HIGHEST

    # All-graph statistics in one shot on the MXU (no per-graph XLU
    # reductions, no sublane-misaligned row slices).
    mean = jnp.dot(s_mean, xf, precision=hi,
                   preferred_element_type=jnp.float32)       # (Gp, Ft)
    mean_full = jnp.dot(s_t, mean, precision=hi,
                        preferred_element_type=jnp.float32)  # (N, Ft)
    diff = xf - mean_full                                    # (N, Ft)

    # Unbiased variance (ddof=1), two-pass form.  For s == 1 torch.std gives
    # NaN; here the divisor is clamped -> var = 0 -> output = beta (finite).
    var = jnp.dot(s_var, diff * diff, precision=hi,
                  preferred_element_type=jnp.float32)        # (Gp, Ft)
    std = jnp.sqrt(var)                                      # (Gp, Ft)

    # eps added to std (matches the torch module).  approx reciprocal rides
    # the otherwise-idle EUP slot; one Newton step -> ~1e-7 rel error.
    d = std + eps
    inv = pl.reciprocal(d, approx=True)
    inv = inv * (2.0 - d * inv)

    scale_g = gamma * inv                                    # (Gp, Ft)
    scale_full = jnp.dot(s_t, scale_g, precision=hi,
                         preferred_element_type=jnp.float32) # (N, Ft)

    # y = (x - mean) * (gamma / (std + eps)) + beta, one dense full-tile store.
    o_ref[...] = (diff * scale_full + beta).astype(o_ref.dtype)


def _pick_vmem_limit(n_total, f_tile, g_pad, x_itemsize):
    """Generation-aware VMEM request with headroom for compiler scratch."""
    try:
        phys = int(pltpu.get_tpu_info().vmem_capacity_bytes)
    except Exception:
        phys = 64 << 20                       # be conservative (v7x per-TC)
    # Never ask for all of physical VMEM; on 128 MiB parts allow up to ~100 MiB.
    cap = min(phys - (8 << 20), 100 << 20)

    io_block = n_total * f_tile * x_itemsize            # one x / out block
    f32_tmps = 4 * n_total * f_tile * 4                 # xf, diff, diff^2, scale_full
    seg_mats = 3 * g_pad * n_total * 4                  # s_mean, s_var, s_t
    need = 2 * 2 * io_block + f32_tmps + 2 * seg_mats + (4 << 20)
    return int(min(max(need, 32 << 20), cap))


def graph_norm(x, graph_size, gamma, beta, eps=1e-5):
    """x: [N, F]; graph_size: static list[int] summing to N; gamma/beta: [F]."""
    n_total, feat = x.shape
    sizes = tuple(int(s) for s in graph_size)
    assert sum(sizes) == n_total and all(s > 0 for s in sizes)
    num_graphs = len(sizes)
    g_pad = ((num_graphs + 7) // 8) * 8      # sublane-align the graph axis

    # Static segment matrices (tiny, O(G*N) f32).  Padded graph rows are all
    # zero and their columns never appear in s_t, so they contribute nothing.
    row_ids = jnp.concatenate(
        [jnp.full((s,), g, dtype=jnp.int32) for g, s in enumerate(sizes)])
    s_t = jax.nn.one_hot(row_ids, g_pad, dtype=jnp.float32)        # (N, Gp)
    inv_n = jnp.array([1.0 / s for s in sizes]
                      + [0.0] * (g_pad - num_graphs), jnp.float32)
    inv_nm1 = jnp.array([1.0 / max(s - 1, 1) for s in sizes]
                        + [0.0] * (g_pad - num_graphs), jnp.float32)
    s_mean = s_t.T * inv_n[:, None]                                # (Gp, N)
    s_var = s_t.T * inv_nm1[:, None]                               # (Gp, N)

    # Feature tiling: lane-dense 128/256-wide tiles whenever feat >= 256 and
    # feat % 128 == 0 so the (parallel) grid has >= 4 pipelined steps.  For
    # small / non-128-multiple F use the full feature extent (block dim equal
    # to the full array dim is allowed; padding would only add HBM traffic).
    if feat >= 256 and feat % 128 == 0:
        f_tile = 256 if (feat % 256 == 0 and feat // 256 >= 4) else 128
    else:
        f_tile = feat
    num_f_tiles = feat // f_tile

    gamma2 = gamma.reshape(1, feat).astype(jnp.float32)
    beta2 = beta.reshape(1, feat).astype(jnp.float32)

    kernel = functools.partial(_graph_norm_kernel, eps=float(eps))
    vmem_limit = _pick_vmem_limit(n_total, f_tile, g_pad, x.dtype.itemsize)

    out = pl.pallas_call(
        kernel,
        out_shape=jax.ShapeDtypeStruct((n_total, feat), x.dtype),
        grid=(num_f_tiles,),
        in_specs=[
            pl.BlockSpec((n_total, f_tile), lambda j: (0, j)),
            pl.BlockSpec((1, f_tile), lambda j: (0, j)),
            pl.BlockSpec((1, f_tile), lambda j: (0, j)),
            pl.BlockSpec((g_pad, n_total), lambda j: (0, 0)),
            pl.BlockSpec((g_pad, n_total), lambda j: (0, 0)),
            pl.BlockSpec((n_total, g_pad), lambda j: (0, 0)),
        ],
        out_specs=pl.BlockSpec((n_total, f_tile), lambda j: (0, j)),
        compiler_params=pltpu.CompilerParams(
            dimension_semantics=("parallel",),
            vmem_limit_bytes=vmem_limit),
    )(x, gamma2, beta2, s_mean, s_var, s_t)
    return out


def graph_norm_reference(x, graph_size, gamma, beta, eps=1e-5):
    outs = []
    off = 0
    for s in graph_size:
        xs = x[off:off + s]
        mean = jnp.mean(xs, axis=0, keepdims=True)
        std = jnp.std(xs, axis=0, keepdims=True, ddof=1)   # torch.std default
        outs.append((xs - mean) / (std + eps))
        off += s
    y = jnp.concatenate(outs, axis=0)
    return gamma * y + beta


if __name__ == "__main__":
    key = jax.random.PRNGKey(0)
    k_x, k_g, k_b = jax.random.split(key, 3)

    num_features = 32
    graph_size = [3, 5, 4]          # static, like torch.split's size list
    n_total = sum(graph_size)       # 12 nodes total

    x = jax.random.normal(k_x, (n_total, num_features), dtype=jnp.float32)
    # Module init uses ones/zeros; use deterministic random values so the
    # affine path is actually exercised.
    gamma = 1.0 + 0.1 * jax.random.normal(k_g, (num_features,), dtype=jnp.float32)
    beta = 0.1 * jax.random.normal(k_b, (num_features,), dtype=jnp.float32)

    out = graph_norm(x, graph_size, gamma, beta, eps=1e-5)
    out = jax.block_until_ready(out)

    ref = graph_norm_reference(x, graph_size, gamma, beta, eps=1e-5)
    assert out.shape == (n_total, num_features)
    max_err = float(jnp.max(jnp.abs(out - ref)))
    assert jnp.allclose(out, ref, atol=2e-5, rtol=2e-5), f"max abs err = {max_err}"

    print("KERNEL_OK")
</pallas_src>

<mosaic_0001>
module attributes {stable_mosaic.version = 11 : i64} {
  func.func @_graph_norm_kernel(%arg0: i32, %arg1: memref<12x32xf32, #tpu.memory_space<vmem>>, %arg2: memref<1x32xf32, #tpu.memory_space<vmem>>, %arg3: memref<1x32xf32, #tpu.memory_space<vmem>>, %arg4: memref<8x12xf32, #tpu.memory_space<vmem>>, %arg5: memref<8x12xf32, #tpu.memory_space<vmem>>, %arg6: memref<12x8xf32, #tpu.memory_space<vmem>>, %arg7: memref<12x32xf32, #tpu.memory_space<vmem>>) attributes {dimension_semantics = [#tpu.dimension_semantics<parallel>], iteration_bounds = array<i64: 1>, scalar_prefetch = 0 : i64, scratch_operands = 0 : i64, tpu.core_type = #tpu.core_type<tc>, window_params = [{transform_indices = @transform_0, window_bounds = array<i64: 12, 32>}, {transform_indices = @transform_1, window_bounds = array<i64: 1, 32>}, {transform_indices = @transform_2, window_bounds = array<i64: 1, 32>}, {pipeline_mode = #tpu.pipeline_mode<synchronous>, transform_indices = @transform_3, window_bounds = array<i64: 8, 12>}, {pipeline_mode = #tpu.pipeline_mode<synchronous>, transform_indices = @transform_4, window_bounds = array<i64: 8, 12>}, {pipeline_mode = #tpu.pipeline_mode<synchronous>, transform_indices = @transform_5, window_bounds = array<i64: 12, 8>}, {transform_indices = @transform_6, window_bounds = array<i64: 12, 32>}]} {
    %c0 = arith.constant 0 : index
    %c0_0 = arith.constant 0 : index
    %0 = vector.load %arg1[%c0, %c0_0] : memref<12x32xf32, #tpu.memory_space<vmem>>, vector<12x32xf32>
    %c0_1 = arith.constant 0 : index
    %c0_2 = arith.constant 0 : index
    %1 = vector.load %arg2[%c0_1, %c0_2] : memref<1x32xf32, #tpu.memory_space<vmem>>, vector<1x32xf32>
    %c0_3 = arith.constant 0 : index
    %c0_4 = arith.constant 0 : index
    %2 = vector.load %arg3[%c0_3, %c0_4] : memref<1x32xf32, #tpu.memory_space<vmem>>, vector<1x32xf32>
    %c0_5 = arith.constant 0 : index
    %c0_6 = arith.constant 0 : index
    %3 = vector.load %arg4[%c0_5, %c0_6] : memref<8x12xf32, #tpu.memory_space<vmem>>, vector<8x12xf32>
    %c0_7 = arith.constant 0 : index
    %c0_8 = arith.constant 0 : index
    %4 = vector.load %arg5[%c0_7, %c0_8] : memref<8x12xf32, #tpu.memory_space<vmem>>, vector<8x12xf32>
    %c0_9 = arith.constant 0 : index
    %c0_10 = arith.constant 0 : index
    %5 = vector.load %arg6[%c0_9, %c0_10] : memref<12x8xf32, #tpu.memory_space<vmem>>, vector<12x8xf32>
    %cst = arith.constant dense<0.000000e+00> : vector<8x32xf32>
    %6 = tpu.matmul %3, %0, %cst {dimension_numbers = #tpu.dot_dimension_numbers<[1], [0], [0], [1], [0, 0, 1, 1], [], []>, precision = #tpu.contract_precision<fp32>} : vector<8x12xf32>, vector<12x32xf32>, vector<8x32xf32> -> vector<8x32xf32>
    %cst_11 = arith.constant dense<0.000000e+00> : vector<12x32xf32>
    %7 = tpu.matmul %5, %6, %cst_11 {dimension_numbers = #tpu.dot_dimension_numbers<[1], [0], [0], [1], [0, 0, 1, 1], [], []>, precision = #tpu.contract_precision<fp32>} : vector<12x8xf32>, vector<8x32xf32>, vector<12x32xf32> -> vector<12x32xf32>
    %8 = arith.subf %0, %7 : vector<12x32xf32>
    %9 = arith.mulf %8, %8 : vector<12x32xf32>
    %cst_12 = arith.constant dense<0.000000e+00> : vector<8x32xf32>
    %10 = tpu.matmul %4, %9, %cst_12 {dimension_numbers = #tpu.dot_dimension_numbers<[1], [0], [0], [1], [0, 0, 1, 1], [], []>, precision = #tpu.contract_precision<fp32>} : vector<8x12xf32>, vector<12x32xf32>, vector<8x32xf32> -> vector<8x32xf32>
    %11 = math.sqrt %10 : vector<8x32xf32>
    %cst_13 = arith.constant 9.99999974E-6 : f32
    %12 = vector.broadcast %cst_13 : f32 to vector<8x32xf32>
    %13 = arith.addf %11, %12 : vector<8x32xf32>
    %14 = tpu.reciprocal %13 {approx = true} : vector<8x32xf32> -> vector<8x32xf32>
    %15 = arith.mulf %13, %14 : vector<8x32xf32>
    %cst_14 = arith.constant 2.000000e+00 : f32
    %16 = vector.broadcast %cst_14 : f32 to vector<8x32xf32>
    %17 = arith.subf %16, %15 : vector<8x32xf32>
    %18 = arith.mulf %14, %17 : vector<8x32xf32>
    %19 = vector.broadcast %1 : vector<1x32xf32> to vector<8x32xf32>
    %20 = arith.mulf %19, %18 : vector<8x32xf32>
    %cst_15 = arith.constant dense<0.000000e+00> : vector<12x32xf32>
    %21 = tpu.matmul %5, %20, %cst_15 {dimension_numbers = #tpu.dot_dimension_numbers<[1], [0], [0], [1], [0, 0, 1, 1], [], []>, precision = #tpu.contract_precision<fp32>} : vector<12x8xf32>, vector<8x32xf32>, vector<12x32xf32> -> vector<12x32xf32>
    %22 = arith.mulf %8, %21 : vector<12x32xf32>
    %23 = vector.broadcast %2 : vector<1x32xf32> to vector<12x32xf32>
    %24 = arith.addf %22, %23 : vector<12x32xf32>
    %c0_16 = arith.constant 0 : index
    %c0_17 = arith.constant 0 : index
    %25 = vector.load %arg7[%c0_16, %c0_17] : memref<12x32xf32, #tpu.memory_space<vmem>>, vector<12x32xf32>
    tpu.vector_store %arg7[%c0_16, %c0_17], %24 {strides = array<i32>} : memref<12x32xf32, #tpu.memory_space<vmem>>, vector<12x32xf32>,
    return
  }
  func.func @transform_0(%arg0: i32) -> (i32, i32) {
    %c0_i32 = arith.constant 0 : i32
    %c0_i32_0 = arith.constant 0 : i32
    return %c0_i32, %arg0 : i32, i32
  }
  func.func @transform_1(%arg0: i32) -> (i32, i32) {
    %c0_i32 = arith.constant 0 : i32
    %c0_i32_0 = arith.constant 0 : i32
    return %c0_i32, %arg0 : i32, i32
  }
  func.func @transform_2(%arg0: i32) -> (i32, i32) {
    %c0_i32 = arith.constant 0 : i32
    %c0_i32_0 = arith.constant 0 : i32
    return %c0_i32, %arg0 : i32, i32
  }
  func.func @transform_3(%arg0: i32) -> (i32, i32) {
    %c0_i32 = arith.constant 0 : i32
    %c0_i32_0 = arith.constant 0 : i32
    %c0_i32_1 = arith.constant 0 : i32
    return %c0_i32, %c0_i32_0 : i32, i32
  }
  func.func @transform_4(%arg0: i32) -> (i32, i32) {
    %c0_i32 = arith.constant 0 : i32
    %c0_i32_0 = arith.constant 0 : i32
    %c0_i32_1 = arith.constant 0 : i32
    return %c0_i32, %c0_i32_0 : i32, i32
  }
  func.func @transform_5(%arg0: i32) -> (i32, i32) {
    %c0_i32 = arith.constant 0 : i32
    %c0_i32_0 = arith.constant 0 : i32
    %c0_i32_1 = arith.constant 0 : i32
    return %c0_i32, %c0_i32_0 : i32, i32
  }
  func.func @transform_6(%arg0: i32) -> (i32, i32) {
    %c0_i32 = arith.constant 0 : i32
    %c0_i32_0 = arith.constant 0 : i32
    return %c0_i32, %arg0 : i32, i32
  }
}

</mosaic_0001>

<bundles_post_ra>
// kernel: tpu_custom_call.1
= control target key start
LH: loop header
LB: loop body
LE: loop exit
PB: predicated region body
PF: predicated region fallthrough
CT: control target
= control target key end

     0   :  { %11 = vsyncpa [#allocation3], 0  ;;  %s2517_s0 = inlined_call_operand.vmem [shape: f32[12,32], index: 0, kind: input, shape index: {}]   ;;  %s2518_s1 = inlined_call_operand.vmem [shape: f32[1,32], index: 1, kind: input, shape index: {}]   ;;  %s2519_s2 = inlined_call_operand.hbm [shape: f32[1,32], index: 2, kind: input, shape index: {}]   ;;  %s2520_s3 = inlined_call_operand.vmem [shape: f32[8,12], index: 3, kind: input, shape index: {}]   ;;  %s2521_s4 = inlined_call_operand.hbm [shape: f32[8,12], index: 4, kind: input, shape index: {}]   ;;  %s2522_s5 = inlined_call_operand.vmem [shape: f32[12,8], index: 5, kind: input, shape index: {}]   ;;  %s2523_s6 = inlined_call_operand.hbm [shape: f32[12,32], index: 6, kind: output, shape index: {}]  }
   0x1   :  { %12 = vsyncpa [#allocation6], 0 }
   0x2   :  { %13 = vsyncpa [#allocation4], 0  ;;  %s2323_s21 = smov [#allocation2]   ;;  %s2324_s23 = smov [#allocation5]  }
   0x3   :  { %s24_s22 = sshll.u32 %s2323_s21, 4  ;;  %s36_s24 = sshll.u32 %s2324_s23, 4  ;;  %s25_s22 = int_to_ptr.vmem [resolvable:$true] %s24_s22  ;;  %s37_s24 = int_to_ptr.vmem [resolvable:$true] %s36_s24 }
   0x4   :  { %s2265_s25 = scalar_lea.vmem %s25_s22, 16  ;;  %s2269_s26 = scalar_lea.vmem %s25_s22, 32 }
   0x5   :  { %p2266_p0 = scmp.ne.s32.totalorder %s25_s22, %s2265_s25  ;;  %p2270_p1 = scmp.lt.s32.totalorder %s25_s22, %s25_s22 }
   0x6   :  { %p2271_p2 = scmp.lt.s32.totalorder %s2269_s26, %s2265_s25 }
   0x8   :  { %p2272_p3 = por %p2271_p2, %p2270_p1 }
   0xa   :  { %p2273_p4 = pnand %p2272_p3, %p2266_p0 }
   0xc   :  { %2276 = shalt.err (!%p2273_p4)
}
   0xd   :  { %27 = dma.hbm_to_vmem [thread:$0]  %s2519_s2, 16, %s25_s22, [#allocation3]  }
   0xe   :  { %s2285_s29 = scalar_lea.vmem %s37_s24, 128  ;;  %p2290_p6 = scmp.lt.s32.totalorder %s37_s24, %s37_s24 }
   0xf   :  { %p2286_p5 = scmp.ne.s32.totalorder %s37_s24, %s2285_s29  ;;  %p2291_p7 = scmp.lt.s32.totalorder %s2285_s29, %s2285_s29 }
  0x11   :  { %p2292_p8 = por %p2291_p7, %p2290_p6 }
  0x13   :  { %p2293_p9 = pnand %p2292_p8, %p2286_p5 }
  0x15   :  { %2296 = shalt.err (!%p2293_p9)
}
  0x16   :  { %39 = dma.hbm_to_vmem [thread:$0]  %s2521_s4, 128, %s37_s24, [#allocation6]  }
  0x17   :  { %2317 = dma.done.wait [#allocation3], 16  }
  0x18   :  { %2318 = vsyncadd [#allocation3], 4294967280 }
  0x19   :  { %2319 = dma.done.wait [#allocation6], 128  }
  0x1a   :  { %2320 = vsyncadd [#allocation6], 4294967168  ;;  %v2325_v0 = vmov 0.0   ;;  %vm2326_vm0 = vmmov 0   ;;  %vm60_vm1 = vcmask 1043456   ;;  %vm56_vm2 = vcmask 97280  }
  0x1b   :  { %2102 = vmatprep.subr.mxu0 %v2325_v0  ;;  %2106 = vmatprep.mubr.msk.f32.mxu0 %vm2326_vm0, %v2325_v0  ;;  %v2380_v1 = vld [vmem:[%s2517_s0 + $0x8] sm:$0xf]  ;;  %v2385_v2 = vld [vmem:[%s2517_s0] sm:$0xff]  ;;  %vm523_vm3 = vcmask 64512   ;;  %vm2008_vm6 = vcmask 257024   ;;  %vm2006_vm7 = vcmask 261120  }
  0x1c   :  { %2109 = vmatprep.subr.mxu1 %v2325_v0  ;;  %2113 = vmatprep.mubr.msk.f32.mxu1 %vm2326_vm0, %v2325_v0  ;;  %v52_v3 = vld [vmem:[%s2520_s3] sm:$0xff]  ;;  %v62_v4 = vsel %vm60_vm1, %v2380_v1, 0  ;;  %v96_v5 = vand.u32 4294901760, %v2385_v2  ;;  %v55_v28 = vld [vmem:[%s2522_s5 + $0x8] sm:$0xf] }
  0x1d   :  { %v58_v6 = vsel %vm56_vm2, %v52_v3, 0  ;;  %v93_v7 = vand.u32 4294901760, %v62_v4  ;;  %v54_v21 = vld [vmem:[%s2522_s5] sm:$0xff]  ;;  %v528_v29 = vsel %vm523_vm3, %v55_v28, 0 }
  0x1e   :  { %v131_v8 = vand.u32 4294901760, %v58_v6  ;;  %v178_v9 = vsub.f32 %v2385_v2, %v96_v5  ;;  %v525_v22 = vsel %vm523_vm3, %v54_v21, 0  ;;  %v2433_v31 = vand.u32 4294901760, %v528_v29  ;;  %v53_v59 = vld [vmem:[#allocation5] sm:$0xff] }
  0x1f   :  { %2103 = vmatpush3.msra.mxu0 %v93_v7  ;;  %v171_v11 = vsub.f32 %v62_v4, %v93_v7  ;;  %v2416_v23 = vand.u32 4294901760, %v525_v22  ;;  %v1024_v61 = vsel %vm56_vm2, %v53_v59, 0 }
  0x20   :  { %v132_v10 = vsub.f32 %v58_v6, %v131_v8  ;;  %2104 = vmatprep.subr.mxu0 %v2325_v0  ;;  %v179_v12 = vand.u32 4294901760, %v178_v9  ;;  %v2436_v37 = vsub.f32 %v528_v29, %v2433_v31  ;;  %v2462_v3 = vand.u32 4294901760, %v1024_v61 }
  0x21   :  { %2105 = vmatpush3.msra.mxu0 %v96_v5  ;;  %v172_v14 = vand.u32 4294901760, %v171_v11  ;;  %v2419_v24 = vsub.f32 %v525_v22, %v2416_v23 }
  0x22   :  { %v133_v13 = vand.u32 4294901760, %v132_v10  ;;  %2116 = vmatprep.subr.mxu0 %v2325_v0  ;;  %v180_v15 = vsub.f32 %v178_v9, %v179_v12  ;;  %v2439_v41 = vand.u32 4294901760, %v2436_v37 }
  0x23   :  { %v173_v17 = vsub.f32 %v171_v11, %v172_v14  ;;  %v2423_v25 = vand.u32 4294901760, %v2419_v24 }
  0x24   :  { %v134_v16 = vsub.f32 %v132_v10, %v133_v13  ;;  %v181_v20 = vand.u32 4294901760, %v180_v15  ;;  %v609_v47 = vsub.f32 %v2436_v37, %v2439_v41 }
  0x25   :  { %v174_v19 = vand.u32 4294901760, %v173_v17  ;;  %v599_v26 = vsub.f32 %v2419_v24, %v2423_v25 }
  0x26   :  { %v135_v18 = vand.u32 4294901760, %v134_v16  ;;  %v2443_v52 = vand.u32 4294901760, %v609_v47 }
  0x27   :  { %2110 = vmatpush3.msra.mxu1 %v174_v19  ;;  %v2427_v27 = vand.u32 4294901760, %v599_v26 }
  0x28   :  { %2107 = vmatmul.mubr.f32.vlgmr.msra.gmra.mxu0 %v135_v18  ;;  %2111 = vmatprep.subr.mxu1 %v2325_v0 }
  0x29   :  { %2117 = vmatpush3.msra.mxu0 %v171_v11  ;;  %2112 = vmatpush3.msra.mxu1 %v181_v20 }
  0x2a   :  { %2118 = vmatprep.subr.mxu0 %v2325_v0  ;;  %2114 = vmatmul.mubr.f32.vlgmr.msra.gmra.mxu1 %v131_v8 }
  0x2b   :  { %2119 = vmatpush3.msra.mxu0 %v178_v9  ;;  %2120 = vmatprep.mubr.msk.f32.mxu0 %vm2326_vm0, %v2325_v0 }
  0x2c   :  { %2123 = vmatprep.subr.mxu1 %v2325_v0  ;;  %2121 = vmatmul.mubr.f32.vlgmr.msra.gmra.mxu0 %v132_v10 }
  0x2d   :  { %2124 = vmatpush3.msra.mxu1 %v93_v7  ;;  %2130 = vmatprep.subr.mxu0 %v2325_v0 }
  0x2e   :  { %2125 = vmatprep.subr.mxu1 %v2325_v0  ;;  %2131 = vmatpush3.msra.mxu0 %v172_v14 }
  0x2f   :  { %2126 = vmatpush3.msra.mxu1 %v96_v5  ;;  %2127 = vmatprep.mubr.msk.f32.mxu1 %vm2326_vm0, %v2325_v0 }
  0x30   :  { %2132 = vmatprep.subr.mxu0 %v2325_v0  ;;  %2128 = vmatmul.mubr.f32.vlgmr.msra.gmra.mxu1 %v133_v13 }
  0x31   :  { %2133 = vmatpush3.msra.mxu0 %v179_v12  ;;  %2134 = vmatprep.mubr.msk.f32.mxu0 %vm2326_vm0, %v2325_v0  ;;  %v1097_v12 = vsub.f32 %v1024_v61, %v2462_v3 }
  0x32   :  { %2137 = vmatprep.subr.mxu1 %v2325_v0  ;;  %2135 = vmatmul.mubr.f32.vlgmr.msra.gmra.mxu0 %v131_v8 }
  0x33   :  { %2138 = vmatpush3.msra.mxu1 %v93_v7  ;;  %2141 = vmatprep.mubr.msk.f32.mxu1 %vm2326_vm0, %v2325_v0  ;;  %v1098_v20 = vand.u32 4294901760, %v1097_v12 }
  0x34   :  { %2139 = vmatprep.subr.mxu1 %v2325_v0  ;;  %2146 = vmatprep.mubr.f32.mxu0 %v2427_v27 }
  0x35   :  { %2140 = vmatpush3.msra.mxu1 %v96_v5 }
  0x36   :  { %2142 = vmatmul.mubr.f32.vlgmr.msra.gmra.mxu1 %v131_v8 }
  0x37   :  { %2151 = vmatprep.mubr.f32.mxu1 %v2416_v23 }
  0xe8   :  { %v137_v30 = vpop.f32.mrf.mxu0 }
  0xea   :  { %v2108_v32 = vpop.f32.mrf.mxu0  ;;  %v218_v33 = vpop.f32.mrf.mxu1 }
  0xeb   :  { %v219_v34 = vadd.f32 %v218_v33, %v137_v30  ;;  %v1099_v30 = vsub.f32 %v1097_v12, %v1098_v20 }
  0xec   :  { %v294_v35 = vpop.f32.mrf.mxu0  ;;  %v2115_v36 = vpop.f32.mrf.mxu1 }
  0xed   :  { %v295_v38 = vadd.f32 %v294_v35, %v219_v34  ;;  %v1100_v36 = vand.u32 4294901760, %v1099_v30 }
  0xee   :  { %v2122_v39 = vpop.f32.mrf.mxu0 }
  0xf0   :  { %v369_v40 = vpop.f32.mrf.mxu1 }
  0xf1   :  { %v370_v42 = vadd.f32 %v369_v40, %v295_v38 }
  0xf2   :  { %v446_v43 = vpop.f32.mrf.mxu0  ;;  %v2129_v44 = vpop.f32.mrf.mxu1 }
  0xf3   :  { %v447_v45 = vadd.f32 %v446_v43, %v370_v42 }
  0xf4   :  { %v2136_v46 = vpop.f32.mrf.mxu0 }
  0xf6   :  { %v519_v48 = vpop.f32.mrf.mxu1 }
  0xf7   :  { %v520_v49 = vadd.f32 %v519_v48, %v447_v45 }
  0xf8   :  { %v2143_v50 = vpop.f32.mrf.mxu1 }
  0xf9   :  { %v561_v51 = vand.u32 4294901760, %v520_v49 }
  0xfb   :  { %v648_v53 = vsub.f32 %v520_v49, %v561_v51  ;;  %2144 = vmatprep.subr.mxu0 %v561_v51 }
  0xfc   :  { %2145 = vmatpush3.msra.mxu0 %v561_v51 }
  0xfd   :  { %2147 = vmatmul.mubr.f32.vlgmr.msra.gmra.mxu0 %v2443_v52  ;;  %2154 = vmatprep.subr.mxu0 %v648_v53  ;;  %v649_v54 = vand.u32 4294901760, %v648_v53 }
  0xfe   :  { %2155 = vmatpush3.msra.mxu0 %v648_v53  ;;  %2156 = vmatprep.mubr.f32.mxu0 %v2419_v24 }
  0xff   :  { %2164 = vmatprep.subr.mxu0 %v649_v54  ;;  %v650_v55 = vsub.f32 %v648_v53, %v649_v54 }
 0x101   :  { %2157 = vmatmul.mubr.f32.vlgmr.msra.gmra.mxu0 %v2436_v37  ;;  %v651_v56 = vand.u32 4294901760, %v650_v55 }
 0x102   :  { %2165 = vmatpush3.msra.mxu0 %v649_v54  ;;  %2166 = vmatprep.mubr.f32.mxu0 %v2416_v23 }
 0x103   :  { %2149 = vmatprep.subr.mxu1 %v651_v56  ;;  %2174 = vmatprep.subr.mxu0 %v2325_v0 }
 0x104   :  { %2150 = vmatpush3.msra.mxu1 %v651_v56 }
 0x105   :  { %2152 = vmatmul.mubr.f32.vlgmr.msra.gmra.mxu1 %v2433_v31  ;;  %2159 = vmatprep.subr.mxu1 %v561_v51 }
 0x106   :  { %2160 = vmatpush3.msra.mxu1 %v561_v51  ;;  %2161 = vmatprep.mubr.f32.mxu1 %v2423_v25 }
 0x107   :  { %2169 = vmatprep.subr.mxu1 %v561_v51  ;;  %2167 = vmatmul.mubr.f32.vlgmr.msra.gmra.mxu0 %v2433_v31 }
 0x108   :  { %2178 = vmatprep.mubr.msk.f32.mxu0 %vm2326_vm0, %v2325_v0 }
 0x109   :  { %2162 = vmatmul.mubr.f32.vlgmr.msra.gmra.mxu1 %v2439_v41 }
 0x10a   :  { %2170 = vmatpush3.msra.mxu1 %v561_v51  ;;  %2171 = vmatprep.mubr.f32.mxu1 %v2416_v23 }
 0x10b   :  { %2181 = vmatprep.subr.mxu1 %v2325_v0 }
 0x10d   :  { %2172 = vmatmul.mubr.f32.vlgmr.msra.gmra.mxu1 %v2433_v31 }
 0x10e   :  { %2185 = vmatprep.mubr.msk.f32.mxu1 %vm2326_vm0, %v2325_v0 }
 0x1bd   :  { %v2148_v57 = vpop.f32.mrf.mxu0 }
 0x1bf   :  { %v602_v58 = vpop.f32.mrf.mxu0 }
 0x1c1   :  { %v2158_v60 = vpop.f32.mrf.mxu0 }
 0x1c3   :  { %v768_v63 = vpop.f32.mrf.mxu0 }
 0x1c5   :  { %v2153_v62 = vpop.f32.mrf.mxu1 }
 0x1c6   :  { %v695_v4 = vadd.f32 %v2153_v62, %v2148_v57 }
 0x1c7   :  { %v688_v5 = vpop.f32.mrf.mxu1  ;;  %v2168_v9 = vpop.f32.mrf.mxu0 }
 0x1c8   :  { %v776_v6 = vadd.f32 %v2158_v60, %v695_v4  ;;  %v689_v7 = vadd.f32 %v688_v5, %v602_v58 }
 0x1c9   :  { %v2163_v8 = vpop.f32.mrf.mxu1  ;;  %v931_v16 = vpop.f32.mrf.mxu0 }
 0x1ca   :  { %v769_v10 = vadd.f32 %v768_v63, %v689_v7  ;;  %v858_v11 = vadd.f32 %v2163_v8, %v776_v6 }
 0x1cb   :  { %v849_v13 = vpop.f32.mrf.mxu1 }
 0x1cc   :  { %v938_v14 = vadd.f32 %v2168_v9, %v858_v11  ;;  %v850_v15 = vadd.f32 %v849_v13, %v769_v10  ;;  %v2028_v9 = vld [vmem:[%s2518_s1] ss:$0 sm:$0xff]  ;;  %s2327_s1 = smov [#allocation7]  }
 0x1cd   :  { %v2173_v17 = vpop.f32.mrf.mxu1  ;;  %s2015_s15 = sshll.u32 %s2327_s1, 4  ;;  %s2016_s15 = int_to_ptr.vmem [resolvable:$true] %s2015_s15 }
 0x1ce   :  { %v932_v18 = vadd.f32 %v931_v16, %v850_v15  ;;  %v1016_v19 = vadd.f32 %v2173_v17, %v938_v14  ;;  %s2297_s16 = scalar_lea.vmem %s2016_s15, 256  ;;  %p2302_p11 = scmp.lt.s32.totalorder %s2016_s15, %s2016_s15 }
 0x1cf   :  { %v1009_v21 = vpop.f32.mrf.mxu1  ;;  %p2298_p10 = scmp.ne.s32.totalorder %s2016_s15, %s2297_s16  ;;  %p2303_p12 = scmp.lt.s32.totalorder %s2297_s16, %s2297_s16 }
 0x1d0   :  { %v2466_v22 = vsub.f32 %v2380_v1, %v1016_v19  ;;  %v1010_v26 = vadd.f32 %v1009_v21, %v932_v18 }
 0x1d1   :  { %p2304_p13 = por %p2303_p12, %p2302_p11 }
 0x1d2   :  { %v1022_v28 = vmul.f32 %v2466_v22, %v2466_v22  ;;  %v2471_v29 = vsub.f32 %v2385_v2, %v1010_v26 }
 0x1d3   :  { %p2305_p0 = pnand %p2304_p13, %p2298_p10 }
 0x1d4   :  { %v1027_v32 = vsel %vm60_vm1, %v1022_v28, 0  ;;  %v1021_v33 = vmul.f32 %v2471_v29, %v2471_v29 }
 0x1d5   :  { %v1058_v34 = vand.u32 4294901760, %v1027_v32 }
 0x1d6   :  { %v1061_v35 = vand.u32 4294901760, %v1021_v33 }
 0x1d7   :  { %2175 = vmatpush3.msra.mxu0 %v1058_v34  ;;  %v1136_v38 = vsub.f32 %v1027_v32, %v1058_v34 }
 0x1d8   :  { %v1143_v1 = vsub.f32 %v1021_v33, %v1061_v35  ;;  %2176 = vmatprep.subr.mxu0 %v2325_v0 }
 0x1d9   :  { %2177 = vmatpush3.msra.mxu0 %v1061_v35  ;;  %v1137_v39 = vand.u32 4294901760, %v1136_v38 }
 0x1da   :  { %2188 = vmatprep.subr.mxu0 %v2325_v0  ;;  %2179 = vmatmul.mubr.f32.vlgmr.msra.gmra.mxu0 %v1100_v36  ;;  %v1144_v2 = vand.u32 4294901760, %v1143_v1 }
 0x1db   :  { %2189 = vmatpush3.msra.mxu0 %v1136_v38  ;;  %2192 = vmatprep.mubr.msk.f32.mxu0 %vm2326_vm0, %v2325_v0  ;;  %v1138_v40 = vsub.f32 %v1136_v38, %v1137_v39  ;;  %v2029_v38 = vld [vmem:[#allocation2] ss:$0 sm:$0xff] }
 0x1dc   :  { %2190 = vmatprep.subr.mxu0 %v2325_v0  ;;  %v1145_v42 = vsub.f32 %v1143_v1, %v1144_v2 }
 0x1dd   :  { %2191 = vmatpush3.msra.mxu0 %v1143_v1  ;;  %v1139_v43 = vand.u32 4294901760, %v1138_v40 }
 0x1de   :  { %2202 = vmatprep.subr.mxu0 %v2325_v0  ;;  %2193 = vmatmul.mubr.f32.vlgmr.msra.gmra.mxu0 %v1097_v12  ;;  %v1146_v44 = vand.u32 4294901760, %v1145_v42 }
 0x1df   :  { %2182 = vmatpush3.msra.mxu1 %v1139_v43  ;;  %2203 = vmatpush3.msra.mxu0 %v1137_v39 }
 0x1e0   :  { %2183 = vmatprep.subr.mxu1 %v2325_v0  ;;  %2204 = vmatprep.subr.mxu0 %v2325_v0 }
 0x1e1   :  { %2184 = vmatpush3.msra.mxu1 %v1146_v44  ;;  %2205 = vmatpush3.msra.mxu0 %v1144_v2 }
 0x1e2   :  { %2186 = vmatmul.mubr.f32.vlgmr.msra.gmra.mxu1 %v2462_v3  ;;  %2195 = vmatprep.subr.mxu1 %v2325_v0 }
 0x1e3   :  { %2196 = vmatpush3.msra.mxu1 %v1058_v34  ;;  %2199 = vmatprep.mubr.msk.f32.mxu1 %vm2326_vm0, %v2325_v0 }
 0x1e4   :  { %2197 = vmatprep.subr.mxu1 %v2325_v0  ;;  %2206 = vmatprep.mubr.msk.f32.mxu0 %vm2326_vm0, %v2325_v0 }
 0x1e5   :  { %2198 = vmatpush3.msra.mxu1 %v1061_v35  ;;  %2207 = vmatmul.mubr.f32.vlgmr.msra.gmra.mxu0 %v2462_v3 }
 0x1e6   :  { %2200 = vmatmul.mubr.f32.vlgmr.msra.gmra.mxu1 %v1098_v20  ;;  %2209 = vmatprep.subr.mxu1 %v2325_v0 }
 0x1e7   :  { %2210 = vmatpush3.msra.mxu1 %v1058_v34  ;;  %2213 = vmatprep.mubr.msk.f32.mxu1 %vm2326_vm0, %v2325_v0 }
 0x1e8   :  { %2211 = vmatprep.subr.mxu1 %v2325_v0  ;;  %2218 = vmatprep.mubr.f32.mxu0 %v2427_v27 }
 0x1e9   :  { %2212 = vmatpush3.msra.mxu1 %v1061_v35 }
 0x1ea   :  { %2214 = vmatmul.mubr.f32.vlgmr.msra.gmra.mxu1 %v2462_v3 }
 0x1eb   :  { %2223 = vmatprep.mubr.f32.mxu1 %v2416_v23 }
 0x29a   :  { %v1102_v45 = vpop.f32.mrf.mxu0 }
 0x29c   :  { %v2180_v46 = vpop.f32.mrf.mxu0 }
 0x29e   :  { %v1259_v47 = vpop.f32.mrf.mxu0 }
 0x2a0   :  { %v2194_v48 = vpop.f32.mrf.mxu0 }
 0x2a2   :  { %v1183_v49 = vpop.f32.mrf.mxu1 }
 0x2a3   :  { %v1184_v50 = vadd.f32 %v1183_v49, %v1102_v45 }
 0x2a4   :  { %v2187_v51 = vpop.f32.mrf.mxu1 }
 0x2a5   :  { %v1260_v53 = vadd.f32 %v1259_v47, %v1184_v50  ;;  %v1411_v54 = vpop.f32.mrf.mxu0 }
 0x2a6   :  { %v1334_v55 = vpop.f32.mrf.mxu1 }
 0x2a7   :  { %v1335_v56 = vadd.f32 %v1334_v55, %v1260_v53  ;;  %v2208_v57 = vpop.f32.mrf.mxu0 }
 0x2a8   :  { %v2201_v0 = vpop.f32.mrf.mxu1 }
 0x2a9   :  { %v1412_v58 = vadd.f32 %v1411_v54, %v1335_v56 }
 0x2aa   :  { %v1484_v27 = vpop.f32.mrf.mxu1 }
 0x2ab   :  { %v1485_v59 = vadd.f32 %v1484_v27, %v1412_v58 }
 0x2ac   :  { %v2215_v60 = vpop.f32.mrf.mxu1 }
 0x2ad   :  { %2253 = vrsqrt.f32 %v1485_v59  ;;  %vm1490_vm4 = vcmp.eq.f32.partialorder %v1485_v59, inf  ;;  %v1493_v63 = vand.u32 2147483648, %v1485_v59  ;;  %vm1492_vm5 = vcmp.eq.f32.partialorder %v1485_v59, 0.0 }
 0x2ba   :  { %v2254_v61 = vpop.eup %2253 }
 0x2bb   :  { %v1489_v62 = vmul.f32 %v2254_v61, %v1485_v59 }
 0x2bd   :  { %v1491_v3 = vsel %vm1490_vm4, %v1485_v59, %v1489_v62 }
 0x2be   :  { %v1494_v4 = vsel %vm1492_vm5, %v1493_v63, %v1491_v3 }
 0x2bf   :  { %v1495_v5 = vadd.f32 1e-05, %v1494_v4 }
 0x2c1   :  { %2255 = vrcp.f32 %v1495_v5 }
 0x2ce   :  { %v2256_v6 = vpop.eup %2255 }
 0x2cf   :  { %v1497_v7 = vmul.f32 %v2256_v6, %v1495_v5 }
 0x2d1   :  { %v1498_v8 = vsub.f32 2.0, %v1497_v7 }
 0x2d3   :  { %v1499_v10 = vmul.f32 %v2256_v6, %v1498_v8 }
 0x2d5   :  { %v1506_v11 = vmul.f32 %v2028_v9, %v1499_v10 }
 0x2d7   :  { %v1538_v12 = vand.u32 4294901760, %v1506_v11 }
 0x2d9   :  { %2216 = vmatprep.subr.mxu0 %v1538_v12  ;;  %v1625_v13 = vsub.f32 %v1506_v11, %v1538_v12 }
 0x2da   :  { %2217 = vmatpush3.msra.mxu0 %v1538_v12 }
 0x2db   :  { %2219 = vmatmul.mubr.f32.vlgmr.msra.gmra.mxu0 %v2443_v52  ;;  %2226 = vmatprep.subr.mxu0 %v1625_v13  ;;  %v1626_v14 = vand.u32 4294901760, %v1625_v13 }
 0x2dc   :  { %2227 = vmatpush3.msra.mxu0 %v1625_v13  ;;  %2228 = vmatprep.mubr.f32.mxu0 %v2419_v24 }
 0x2dd   :  { %2236 = vmatprep.subr.mxu0 %v1626_v14  ;;  %v1627_v15 = vsub.f32 %v1625_v13, %v1626_v14 }
 0x2df   :  { %2229 = vmatmul.mubr.f32.vlgmr.msra.gmra.mxu0 %v2436_v37  ;;  %v1628_v16 = vand.u32 4294901760, %v1627_v15 }
 0x2e0   :  { %2237 = vmatpush3.msra.mxu0 %v1626_v14  ;;  %2238 = vmatprep.mubr.f32.mxu0 %v2416_v23 }
 0x2e1   :  { %2221 = vmatprep.subr.mxu1 %v1628_v16 }
 0x2e2   :  { %2222 = vmatpush3.msra.mxu1 %v1628_v16 }
 0x2e3   :  { %2224 = vmatmul.mubr.f32.vlgmr.msra.gmra.mxu1 %v2433_v31  ;;  %2231 = vmatprep.subr.mxu1 %v1538_v12 }
 0x2e4   :  { %2232 = vmatpush3.msra.mxu1 %v1538_v12  ;;  %2233 = vmatprep.mubr.f32.mxu1 %v2423_v25 }
 0x2e5   :  { %2241 = vmatprep.subr.mxu1 %v1538_v12  ;;  %2239 = vmatmul.mubr.f32.vlgmr.msra.gmra.mxu0 %v2433_v31 }
 0x2e7   :  { %2234 = vmatmul.mubr.f32.vlgmr.msra.gmra.mxu1 %v2439_v41 }
 0x2e8   :  { %2242 = vmatpush3.msra.mxu1 %v1538_v12  ;;  %2243 = vmatprep.mubr.f32.mxu1 %v2416_v23 }
 0x2eb   :  { %2244 = vmatmul.mubr.f32.vlgmr.msra.gmra.mxu1 %v2433_v31 }
 0x39b   :  { %v2220_v24 = vpop.f32.mrf.mxu0 }
 0x39d   :  { %v1579_v37 = vpop.f32.mrf.mxu0 }
 0x39f   :  { %v2230_v52 = vpop.f32.mrf.mxu0 }
 0x3a1   :  { %v1745_v18 = vpop.f32.mrf.mxu0 }
 0x3a3   :  { %v2225_v17 = vpop.f32.mrf.mxu1 }
 0x3a4   :  { %v1672_v19 = vadd.f32 %v2225_v17, %v2220_v24 }
 0x3a5   :  { %v1665_v20 = vpop.f32.mrf.mxu1  ;;  %v2240_v28 = vpop.f32.mrf.mxu0 }
 0x3a6   :  { %v1666_v21 = vadd.f32 %v1665_v20, %v1579_v37  ;;  %v1753_v26 = vadd.f32 %v2230_v52, %v1672_v19 }
 0x3a7   :  { %v2235_v25 = vpop.f32.mrf.mxu1  ;;  %v1908_v35 = vpop.f32.mrf.mxu0 }
 0x3a8   :  { %v1746_v30 = vadd.f32 %v1745_v18, %v1666_v21  ;;  %v1835_v32 = vadd.f32 %v2235_v25, %v1753_v26 }
 0x3a9   :  { %v1826_v33 = vpop.f32.mrf.mxu1 }
 0x3aa   :  { %v1827_v41 = vadd.f32 %v1826_v33, %v1746_v30  ;;  %v1915_v34 = vadd.f32 %v2240_v28, %v1835_v32 }
 0x3ab   :  { %v2245_v23 = vpop.f32.mrf.mxu1 }
 0x3ac   :  { %v1909_v36 = vadd.f32 %v1908_v35, %v1827_v41  ;;  %v1993_v31 = vadd.f32 %v2245_v23, %v1915_v34 }
 0x3ad   :  { %v1986_v1 = vpop.f32.mrf.mxu1 }
 0x3ae   :  { %v1997_v39 = vmul.f32 %v1993_v31, %v2466_v22  ;;  %v1987_v2 = vadd.f32 %v1986_v1, %v1909_v36 }
 0x3b0   :  { %v2005_v40 = vadd.f32 %v2029_v38, %v1997_v39  ;;  %v1996_v42 = vmul.f32 %v1987_v2, %v2471_v29 }
 0x3b2   :  { %v2004_v43 = vadd.f32 %v2029_v38, %v1996_v42  ;;  %2009 = vst.msk [vmem:[#allocation7 + $0x8] sm:$0xf] %vm2008_vm6, %v2005_v40 }
 0x3b4   :  { %2007 = vst.msk [vmem:[#allocation7] sm:$0xff] %vm2006_vm7, %v2004_v43 }
 0x3b5   :  { %2308 = shalt.err (!%p2305_p0)
}
 0x3b6   :  { %s2328_s17 = smov 128   ;;  %s2329_s18 = smov 8  }
 0x3b7   :  { %2021 = dma.vmem_to_hbm [thread:$0]  %s2016_s15, 256, %s2523_s6, [#allocation4], %s2328_s17, %s2328_s17, %s2329_s18  }
 0x3b8   :  { %2321 = dma.done.wait [#allocation4], 256  }
 0x3b9   :  { %2322 = vsyncadd [#allocation4], 4294967040 }
 0x3ba   :  { %2025 = vsyncpa [#allocation3], 1 }
 0x3bb   :  { %2026 = vsyncpa [#allocation6], 1 }
 0x3bc   :  { %2027 = vsyncpa [#allocation4], 1 }

</bundles_post_ra>
